<compile_context>
chip_gen: v5e
topology: v5e:2x2
jax: 0.10.0
libtpu: 0.0.40
codegen_flags: <defaults>
</compile_context>

<pallas_src>
import itertools
from functools import partial
from typing import NamedTuple, Any

import numpy as np
import jax
import jax.numpy as jnp
from jax.experimental import pallas as pl
from jax.experimental.pallas import tpu as pltpu


class PersistenceInformation(NamedTuple):
    pairing: Any
    diagram: Any
    dimension: int


# ----------------------------------------------------------------------------
# Kernel 1: pairwise Minkowski-p distances (torch.cdist equivalent), tiled.
# ----------------------------------------------------------------------------
def _cdist_kernel(xr_ref, xc_ref, d_ref, *, p, d_actual):
    xr = xr_ref[0].astype(jnp.float32)                                # (tm, Dp)
    xc = xc_ref[0].astype(jnp.float32)                                # (tn, Dp)
    if p == 2:
        sr = jnp.sum(xr * xr, axis=-1, keepdims=True)                 # (tm, 1)
        sc = jnp.sum(xc * xc, axis=-1, keepdims=True)                 # (tn, 1)
        g = jnp.dot(xr, xc.T, preferred_element_type=jnp.float32)     # (tm, tn) on MXU
        d2 = sr + sc.T - 2.0 * g
        # NOTE: forward value matches torch.cdist; the sqrt gradient at exactly-zero
        # distances (diagonal) would need an epsilon if this ever feeds a backward pass.
        d_ref[0] = jnp.sqrt(jnp.maximum(d2, 0.0))
    else:
        # Accumulate |x_i - x_j|^p per coordinate: (tm, tn) f32 accumulator only,
        # no (tm, tn, D) temporary.
        acc = jnp.zeros((xr.shape[0], xc.shape[0]), jnp.float32)
        for d in range(d_actual):                                     # static unroll over coords
            diff = jnp.abs(xr[:, d:d + 1] - xc[:, d:d + 1].T)         # (tm, tn)
            acc = acc + (diff if p == 1 else jnp.power(diff, float(p)))
        d_ref[0] = acc if p == 1 else jnp.power(acc, 1.0 / float(p))


def _pick_row_tile(n):
    for t in (512, 256, 128, 64, 32, 16, 8):                          # sublane axis: mult. of 8
        if n % t == 0:
            return t
    return n                                                          # full extent is always legal


def _pick_col_tile(n):
    for t in (512, 256, 128):                                         # lane axis: mult. of 128
        if n % t == 0:
            return t
    return n                                                          # or full extent


def pallas_cdist(x, p=2):
    """x: (B, N, D) -> (B, N, N) float32 pairwise Minkowski-p distances."""
    B, N, D = x.shape
    x = x.astype(jnp.float32)
    if D < 8:                       # tiny coord pad only (zero padding keeps all distances exact)
        x = jnp.pad(x, ((0, 0), (0, 0), (0, 8 - D)))
    Dp = x.shape[-1]
    tm = _pick_row_tile(N)
    tn = _pick_col_tile(N)
    return pl.pallas_call(
        partial(_cdist_kernel, p=p, d_actual=D),
        out_shape=jax.ShapeDtypeStruct((B, N, N), jnp.float32),
        grid=(B, N // tm, N // tn),
        in_specs=[pl.BlockSpec((1, tm, Dp), lambda b, i, j: (b, i, 0)),   # row tile of x
                  pl.BlockSpec((1, tn, Dp), lambda b, i, j: (b, j, 0))],  # col tile of x
        out_specs=pl.BlockSpec((1, tm, tn), lambda b, i, j: (b, i, j)),
        compiler_params=pltpu.CompilerParams(
            dimension_semantics=("parallel", "parallel", "parallel")),
    )(x, x)


# ----------------------------------------------------------------------------
# Kernel 2: filtration weights / persistence diagram extraction, batched over B.
#   For every pairing row, the creator / destroyer weight is the max pairwise
#   distance among its vertices (== _get_filtration_weight). Pairings arrive
#   transposed (K, Mp) so rows are lane-major; per-column one-hots and gathered
#   distance columns are hoisted and shared across all vertex combinations.
# ----------------------------------------------------------------------------
def _diagram_kernel(pairs_ref, dist_ref, out_ref, *, dim):
    dist = dist_ref[0]                        # (N, N) f32
    pairs_t = pairs_ref[0]                    # (K, Mp) int32, K = 2*dim+3
    N = dist.shape[0]
    Mp = pairs_t.shape[1]
    K = 2 * dim + 3

    row_iota = jax.lax.broadcasted_iota(jnp.int32, (N, Mp), 0)

    oh_cache = {}

    def one_hot(c):                           # (N, Mp): [i, m] = (i == pairs[m, c])
        if c not in oh_cache:
            oh_cache[c] = (row_iota == pairs_t[c:c + 1, :]).astype(jnp.float32)
        return oh_cache[c]

    col_cache = {}

    def dist_cols(c):                         # (N, Mp): [i, m] = dist[i, pairs[m, c]]
        if c not in col_cache:
            col_cache[c] = jnp.dot(dist, one_hot(c), preferred_element_type=jnp.float32)
        return col_cache[c]

    def simplex_weight(cols):                 # max pairwise distance over simplex vertices
        w = None
        for a, b in itertools.combinations(cols, 2):          # static combos
            v = jnp.sum(dist_cols(a) * one_hot(b), axis=0, keepdims=True)   # (1, Mp)
            w = v if w is None else jnp.maximum(w, v)
        return w

    creators = (jnp.zeros((1, Mp), jnp.float32) if dim == 0
                else simplex_weight(tuple(range(dim + 1))))
    destroyers = simplex_weight(tuple(range(dim + 1, K)))
    out_ref[0] = jnp.concatenate([creators, destroyers], axis=0)    # (2, Mp) lane-dense store


def pallas_diagram_batched(pairs_list, dist, dim):
    """pairs_list: per-batch (M_b, 2*dim+3) int arrays; dist: (B, N, N) f32.
    One pallas_call for all batches; returns per-batch (M_b, 2) float32 diagrams."""
    B, N, _ = dist.shape
    K = 2 * dim + 3
    Ms = [int(np.asarray(pr).shape[0]) for pr in pairs_list]
    M_max = max(Ms)
    Mp = max(128, ((M_max + 127) // 128) * 128)          # lane-dense padded pairing width

    # Pairings transposed to (K, Mp); padded columns reference vertex 0 (dist[0,0] == 0) and
    # are sliced away below -- never reduce across padded lanes without slicing first.
    pairs_t = np.zeros((B, K, Mp), np.int32)
    for b, pr in enumerate(pairs_list):
        if Ms[b]:
            pairs_t[b, :, :Ms[b]] = np.asarray(pr, dtype=np.int32).T
    pairs_t = jnp.asarray(pairs_t)

    out = pl.pallas_call(
        partial(_diagram_kernel, dim=dim),
        out_shape=jax.ShapeDtypeStruct((B, 2, Mp), jnp.float32),
        grid=(B,),
        in_specs=[pl.BlockSpec((1, K, Mp), lambda b: (b, 0, 0)),
                  pl.BlockSpec((1, N, N), lambda b: (b, 0, 0))],
        out_specs=pl.BlockSpec((1, 2, Mp), lambda b: (b, 0, 0)),
        compiler_params=pltpu.CompilerParams(dimension_semantics=("parallel",)),
    )(pairs_t, dist)

    return [out[b, :, :Ms[b]].T for b in range(B)]       # (M_b, 2) each


# ----------------------------------------------------------------------------
# Module wrapper
# ----------------------------------------------------------------------------
class AlphaComplex:
    def __init__(self, p=2):
        self.p = p

    def __call__(self, x, persistence_pairs_per_batch):
        # TODO(synk): gudhi.AlphaComplex / simplex-tree persistence pairing is a host-side
        # combinatorial algorithm with no Pallas equivalent; pairings are supplied externally
        # (deterministic synthetic ones in __main__).
        dist = pallas_cdist(x, p=self.p)                  # (B, N, N)
        B, N, D = x.shape
        results = [[] for _ in range(B)]
        for dim in range(D):                              # max_dim = x.shape[-1]
            pairs_list = [persistence_pairs_per_batch[b][dim] for b in range(B)]
            Ms = [int(np.asarray(pr).shape[0]) for pr in pairs_list]
            if max(Ms) == 0:
                for b in range(B):
                    results[b].append(PersistenceInformation(pairing=[], diagram=[],
                                                             dimension=dim))
                continue
            diags = pallas_diagram_batched(pairs_list, dist, dim)   # one call per dim, all batches
            for b in range(B):
                if Ms[b] == 0:
                    results[b].append(PersistenceInformation(pairing=[], diagram=[],
                                                             dimension=dim))
                else:
                    results[b].append(PersistenceInformation(pairing=pairs_list[b],
                                                             diagram=diags[b],
                                                             dimension=dim))
        return results, dist


# ----------------------------------------------------------------------------
# Pure-numpy reference (mirrors the torch code) for correctness checking
# ----------------------------------------------------------------------------
def _ref_cdist(x, p=2):
    diff = np.abs(x[:, :, None, :] - x[:, None, :, :])
    return (diff ** p).sum(-1) ** (1.0 / p)


def _ref_weight(simplex, dist):
    return max(dist[a, b] for a, b in itertools.combinations(simplex, 2))


def _ref_diagram(pairs, dist, dim):
    out = np.zeros((pairs.shape[0], 2), np.float32)
    for i, row in enumerate(pairs):
        out[i, 0] = 0.0 if dim == 0 else _ref_weight(row[: dim + 1], dist)
        out[i, 1] = _ref_weight(row[dim + 1:], dist)
    return out


# ----------------------------------------------------------------------------
if __name__ == "__main__":
    B, N, D = 2, 16, 3
    key = jax.random.PRNGKey(0)
    x = jax.random.normal(key, (B, N, D), dtype=jnp.float32)

    # Deterministic synthetic persistence pairings (creator | destroyer vertices).
    pairs_dim0 = jnp.asarray([[i, i - 1, i] for i in range(1, N)], jnp.int32)      # (N-1, 3)
    pairs_dim1 = jnp.asarray([[0, 1, 0, 1, 2],
                              [2, 3, 1, 2, 3],
                              [4, 5, 3, 4, 5]], jnp.int32)                         # (3, 5)
    pairs_dim2 = jnp.asarray([[0, 1, 2, 0, 1, 2, 3],
                              [4, 5, 6, 4, 5, 6, 7]], jnp.int32)                   # (2, 7)
    pairings = [[pairs_dim0, pairs_dim1, pairs_dim2] for _ in range(B)]

    x_np = np.asarray(x)
    for p_norm in (2, 1):                     # exercise both the MXU gram path and the VPU path
        module = AlphaComplex(p=p_norm)
        results, dist = module(x, pairings)
        dist = jax.block_until_ready(dist)
        dist_ref = _ref_cdist(x_np, p=p_norm)
        assert np.allclose(np.asarray(dist), dist_ref, atol=1e-3, rtol=1e-3)
        for b in range(B):
            for dim in range(D):
                pairs_np = np.asarray(pairings[b][dim])
                diag = jax.block_until_ready(results[b][dim].diagram)
                diag_ref = _ref_diagram(pairs_np, dist_ref[b], dim)
                assert np.allclose(np.asarray(diag), diag_ref, atol=1e-3, rtol=1e-3)

    print("KERNEL_OK")
</pallas_src>

<mosaic_0001>
module attributes {stable_mosaic.version = 11 : i64} {
  func.func @_cdist_kernel(%arg0: i32, %arg1: i32, %arg2: i32, %arg3: memref<1x16x8xf32, #tpu.memory_space<vmem>>, %arg4: memref<1x16x8xf32, #tpu.memory_space<vmem>>, %arg5: memref<1x16x16xf32, #tpu.memory_space<vmem>>) attributes {dimension_semantics = [#tpu.dimension_semantics<parallel>, #tpu.dimension_semantics<parallel>, #tpu.dimension_semantics<parallel>], iteration_bounds = array<i64: 2, 1, 1>, scalar_prefetch = 0 : i64, scratch_operands = 0 : i64, tpu.core_type = #tpu.core_type<tc>, window_params = [{transform_indices = @transform_0, window_bounds = array<i64: 1, 16, 8>}, {transform_indices = @transform_1, window_bounds = array<i64: 1, 16, 8>}, {transform_indices = @transform_2, window_bounds = array<i64: 1, 16, 16>}]} {
    %c0 = arith.constant 0 : index
    %c0_0 = arith.constant 0 : index
    %c0_1 = arith.constant 0 : index
    %0 = vector.load %arg3[%c0, %c0_0, %c0_1] : memref<1x16x8xf32, #tpu.memory_space<vmem>>, vector<1x16x8xf32>
    %1 = vector.shape_cast %0 : vector<1x16x8xf32> to vector<16x8xf32>
    %c0_2 = arith.constant 0 : index
    %c0_3 = arith.constant 0 : index
    %c0_4 = arith.constant 0 : index
    %2 = vector.load %arg4[%c0_2, %c0_3, %c0_4] : memref<1x16x8xf32, #tpu.memory_space<vmem>>, vector<1x16x8xf32>
    %3 = vector.shape_cast %2 : vector<1x16x8xf32> to vector<16x8xf32>
    %4 = arith.mulf %1, %1 : vector<16x8xf32>
    %cst = arith.constant dense<0.000000e+00> : vector<16xf32>
    %5 = vector.multi_reduction <add>, %4, %cst [1] : vector<16x8xf32> to vector<16xf32>
    %6 = vector.shape_cast %5 : vector<16xf32> to vector<16x1xf32>
    %7 = arith.mulf %3, %3 : vector<16x8xf32>
    %cst_5 = arith.constant dense<0.000000e+00> : vector<16xf32>
    %8 = vector.multi_reduction <add>, %7, %cst_5 [1] : vector<16x8xf32> to vector<16xf32>
    %9 = vector.shape_cast %8 : vector<16xf32> to vector<16x1xf32>
    %10 = tpu.transpose %3, [1, 0] : vector<16x8xf32> -> vector<8x16xf32>
    %cst_6 = arith.constant dense<0.000000e+00> : vector<16x16xf32>
    %11 = tpu.matmul %1, %10, %cst_6 {dimension_numbers = #tpu.dot_dimension_numbers<[1], [0], [0], [1], [0, 0, 1, 1], [], []>} : vector<16x8xf32>, vector<8x16xf32>, vector<16x16xf32> -> vector<16x16xf32>
    %12 = tpu.transpose %9, [1, 0] : vector<16x1xf32> -> vector<1x16xf32>
    %13 = vector.broadcast %6 : vector<16x1xf32> to vector<16x16xf32>
    %14 = vector.broadcast %12 : vector<1x16xf32> to vector<16x16xf32>
    %15 = arith.addf %13, %14 : vector<16x16xf32>
    %cst_7 = arith.constant 2.000000e+00 : f32
    %16 = vector.broadcast %cst_7 : f32 to vector<16x16xf32>
    %17 = arith.mulf %16, %11 : vector<16x16xf32>
    %18 = arith.subf %15, %17 : vector<16x16xf32>
    %cst_8 = arith.constant 0.000000e+00 : f32
    %19 = vector.broadcast %cst_8 : f32 to vector<16x16xf32>
    %20 = arith.maximumf %18, %19 : vector<16x16xf32>
    %21 = math.sqrt %20 : vector<16x16xf32>
    %c0_9 = arith.constant 0 : index
    %c0_10 = arith.constant 0 : index
    %c0_11 = arith.constant 0 : index
    %22 = vector.load %arg5[%c0_9, %c0_10, %c0_11] : memref<1x16x16xf32, #tpu.memory_space<vmem>>, vector<1x16x16xf32>
    %23 = vector.shape_cast %22 : vector<1x16x16xf32> to vector<16x16xf32>
    %24 = vector.shape_cast %21 : vector<16x16xf32> to vector<1x16x16xf32>
    tpu.vector_store %arg5[%c0_9, %c0_10, %c0_11], %24 {strides = array<i32>} : memref<1x16x16xf32, #tpu.memory_space<vmem>>, vector<1x16x16xf32>,
    return
  }
  func.func @transform_0(%arg0: i32, %arg1: i32, %arg2: i32) -> (i32, i32, i32) {
    %c0_i32 = arith.constant 0 : i32
    %c0_i32_0 = arith.constant 0 : i32
    return %arg0, %arg1, %c0_i32 : i32, i32, i32
  }
  func.func @transform_1(%arg0: i32, %arg1: i32, %arg2: i32) -> (i32, i32, i32) {
    %c0_i32 = arith.constant 0 : i32
    %c0_i32_0 = arith.constant 0 : i32
    return %arg0, %arg2, %c0_i32 : i32, i32, i32
  }
  func.func @transform_2(%arg0: i32, %arg1: i32, %arg2: i32) -> (i32, i32, i32) {
    %c0_i32 = arith.constant 0 : i32
    return %arg0, %arg1, %arg2 : i32, i32, i32
  }
}

</mosaic_0001>

<bundles_post_ra>
// kernel: tpu_custom_call.1
= control target key start
LH: loop header
LB: loop body
LE: loop exit
PB: predicated region body
PF: predicated region fallthrough
CT: control target
= control target key end

     0   :  { %7 = vsyncpa [#allocation3], 0  ;;  %s759_s0 = inlined_call_operand.vmem [shape: f32[2,16,8], index: 0, kind: input, shape index: {}]   ;;  %s760_s1 = inlined_call_operand.vmem [shape: f32[2,16,8], index: 1, kind: input, shape index: {}]   ;;  %s761_s2 = inlined_call_operand.hbm [shape: f32[2,16,16], index: 2, kind: output, shape index: {}]  }
   0x1   :  { %9 = vsyncpa [#allocation3 + $0x1], 0  ;;  %s645_s9 = smov 0   ;;  %s647_s10 = smov 0  }
   0x2   :  { %s649_s11 = smov 0   ;;  %s651_s12 = smov 0  }
   0x3   :  { %s653_s13 = smov 0   ;;  %s655_s14 = smov 0  }
   0x4 LB: > { %s462_s15 = sadd.s32 4294967295, %s626_s14   ;;  %s463_s16 = sadd.s32 4294967294, %s626_s14   ;;  %s626_s14 = sphi %s655_s14, %s15_s14   ;;  %s622_s13 = sphi %s653_s13, %s768_s13   ;;  %s618_s12 = sphi %s651_s12, %s767_s12   ;;  %s614_s11 = sphi %s649_s11, %s766_s11   ;;  %s610_s10 = sphi %s647_s10, %s765_s10   ;;  %s606_s9 = sphi %s645_s9, %s764_s9  }
   0x5   : > { %s34_s17 = sadd.s32 1, %s622_s13  ;;  %s101_s18 = sadd.s32 1, %s614_s11 }
   0x6   : > { %p36_p0 = scmp.ge.s32.totalorder %s34_s17, 2  ;;  %p111_p1 = scmp.ne.s32.totalorder %s614_s11, %s610_s10 }
   0x7   : > { %p112_p2 = scmp.eq.s32.totalorder %s462_s15, 1  ;;  %p117_p3 = scmp.ne.s32.totalorder %s610_s10, %s606_s9 }
   0x8   : > { %s770_s17 = smov (%p36_p0, %s34_s17), 0  ;;  %p118_p5 = scmp.eq.s32.totalorder %s463_s16, 1 }
   0x9   : > { %p685_p4 = por %p112_p2, %p111_p1  ;;  %s94_s20 = ssub.s32 %s622_s13, %s770_s17 }
   0xa   : > { %p466_p6 = scmp.ge.s32.totalorder %s626_s14, 1  ;;  %p99_p7 = scmp.eq.s32.totalorder %s94_s20, 0 }
   0xb   : > { %p692_p8 = por %p118_p5, %p117_p3  ;;  %p162_p9 = scmp.lt.s32.totalorder %s626_s14, 3 }
   0xc   : > { %s698_s22 = scalar_select %p99_p7, %s614_s11, %s101_s18  }
   0xd   : > { %p163_p10 = pnand %p466_p6, %p162_p9 }
   0xe   : > { %p198_p11 = scmp.lt.s32.totalorder (!%p163_p10), %s618_s12, 1  ;;  %s194_s3 = sand.u32 (!%p163_p10), 1, %s610_s10  }
   0xf   : > { %166 = sbr.rel (%p163_p10) target bundleno = 332 (0x14c), region = 28  ;;  %s467_s4 = sshll.u32 (!%p163_p10), %s194_s3, 4 }
  0x10   : > { %s483_s5 = sshll.u32 (!%p163_p10), %s618_s12, 4  ;;  %s196_s15 = scalar_lea.vmem (!%p163_p10), [#allocation2], %s467_s4 }
  0x11   : > { %s357_s8 = scalar_lea.hbm (!%p163_p10), %s761_s2, %s483_s5  ;;  %s358_s16 = sshll.u32 (!%p163_p10), %s196_s15, 4  ;;  %s359_s16 = int_to_ptr.vmem [resolvable:$true] %s358_s16 }
  0x12   : > { %s360_s18 = sshll.u32 (!%p163_p10), %s357_s8, 4  ;;  %s568_s26 = scalar_lea.hbm (!%p163_p10), %s761_s2, 32  ;;  %s361_s18 = int_to_ptr.hbm [resolvable:$true] %s360_s18 }
  0x13   : > { %s562_s20 = sshra.s32 (!%p163_p10), %s361_s18, 4  ;;  %s563_s20 = int_to_ptr.hbm [resolvable:$true] %s562_s20 }
  0x14   : > { %s199_s23 = scalar_select %p198_p11, %s618_s12, 1  ;;  %vm224_vm0 = vcmask 64512   ;;  %vm339_vm2 = vcmask 130048  }
  0x15   : > { %s343_s12 = scalar_lea.sflag [#allocation3], %s194_s3  ;;  %p569_p1 = scmp.lt.s32.totalorder %s563_s20, %s761_s2 }
  0x16   : > { %s481_s24 = sshll.u32 %s199_s23, 4  ;;  %s564_s23 = scalar_lea.hbm %s563_s20, 16 }
  0x17   : > { %s215_s27 = scalar_lea.vmem %s760_s1, %s481_s24  ;;  %s205_s30 = scalar_lea.vmem %s759_s0, %s481_s24 }
  0x18   : > { %v220_v0 = vld [vmem:[%s215_s27] sm:$0xff]  ;;  %v221_v1 = vld [vmem:[%s215_s27 + $0x8] sm:$0xff]  ;;  %p565_p12 = scmp.ne.s32.totalorder %s563_s20, %s564_s23  ;;  %p570_p2 = scmp.lt.s32.totalorder %s568_s26, %s564_s23 }
  0x19   : > { %v231_v2 = vmul.f32 %v220_v0, %v220_v0  ;;  %472 = vmatpush.xpose.msk.msra.mxu0 %vm224_vm0, %v221_v1  ;;  %484 = vmatpush.xpose.msk.msra.mxu1 %vm224_vm0, %v221_v1  ;;  %v232_v4 = vmul.f32 %v221_v1, %v221_v1  ;;  %v218_v6 = vld [vmem:[%s205_s30] sm:$0xff]  ;;  %v219_v7 = vld [vmem:[%s205_s30 + $0x8] sm:$0xff] }
  0x1a   : > { %v222_v8 = vmul.f32 %v218_v6, %v218_v6  ;;  %v223_v10 = vmul.f32 %v219_v7, %v219_v7  ;;  %p566_p13 = pnand %p565_p12, %p685_p4  ;;  %p571_p3 = por %p570_p2, %p569_p1 }
  0x1b   : > { %v233_v3 = vsel %vm224_vm0, %v231_v2, 0.0  ;;  %v236_v5 = vsel %vm224_vm0, %v232_v4, 0.0 }
  0x1c   : > { %234 = vadd.xlane.f32.xlu0 %v233_v3  ;;  %v225_v9 = vsel %vm224_vm0, %v222_v8, 0.0  ;;  %v228_v11 = vsel %vm224_vm0, %v223_v10, 0.0  ;;  %p567_p0 = pneg %p566_p13 }
  0x1d   : > { %473 = vmatpush.xpose.msk.msra.mxu0 %vm224_vm0, %v220_v0  ;;  %485 = vmatpush.xpose.msk.msra.mxu1 %vm224_vm0, %v220_v0 }
  0x1e   : > { %226 = vadd.xlane.f32.xlu1 %v225_v9  ;;  %p572_p5 = pnand %p571_p3, %p567_p0 }
  0x20   : > { %474 = vmatmul.msk.f32.vlgmr.msra.gmra.mxu0 %vm224_vm0, %v218_v6  ;;  %475 = vmatmul.msk.f32.vlgmr.msra.gmra.mxu1 %vm224_vm0, %v219_v7 }
  0x24   : > { %237 = vadd.xlane.f32.xlu0 %v236_v5 }
  0x26   : > { %229 = vadd.xlane.f32.xlu1 %v228_v11 }
  0x8f   : > { %v235_v12 = vpop.xlane.xlu0 %234 }
  0x90   : > { %274 = vxpose.xlu2.b32.start [1/2] (short) (narrow) %v235_v12, 8 }
  0x91   : > { %v227_v14 = vpop.xlane.xlu1 %226 }
  0x97   : > { %v238_v13 = vpop.xlane.xlu0 %237 }
  0x98   : > { %275 = vxpose.xlu2.b32.end [2/2] (short) (narrow) %v238_v13, 8 }
  0x99   : > { %v230_v18 = vpop.xlane.xlu1 %229 }
  0x9d   : > { %v268_v15 = vpop.f32.mrf.mxu0  ;;  %v271_v16 = vpop.f32.mrf.mxu1 }
  0x9e   : > { %v309_v20 = vmul.f32 2.0, %v268_v15  ;;  %v310_v21 = vmul.f32 2.0, %v271_v16 }
 0x129   : > { %v290_v17 = vpop.trf.xlu2 }
 0x12a   : > { %v306_v19 = vperm.slane %v290_v17, 0 }
 0x12c   : > { %v307_v22 = vadd.f32 %v306_v19, %v227_v14  ;;  %v308_v23 = vadd.f32 %v306_v19, %v230_v18 }
 0x12e   : > { %v311_v24 = vsub.f32 %v307_v22, %v309_v20  ;;  %v312_v25 = vsub.f32 %v308_v23, %v310_v21 }
 0x130   : > { %v313_v26 = vmax.f32 %v311_v24, 0.0  ;;  %v314_v27 = vmax.f32 %v312_v25, 0.0 }
 0x132   : > { %544 = vrsqrt.f32 %v313_v26  ;;  %vm322_vm1 = vcmp.eq.f32.partialorder %v313_v26, inf  ;;  %v325_v41 = vand.u32 2147483648, %v313_v26  ;;  %vm324_vm3 = vcmp.eq.f32.partialorder %v313_v26, 0.0 }
 0x133   : > { %546 = vrsqrt.f32 %v314_v27  ;;  %vm334_vm4 = vcmp.eq.f32.partialorder %v314_v27, inf  ;;  %v337_v44 = vand.u32 2147483648, %v314_v27  ;;  %vm336_vm5 = vcmp.eq.f32.partialorder %v314_v27, 0.0 }
 0x138   : > { %v545_v28 = vpop.eup %544 }
 0x139   : > { %v547_v29 = vpop.eup %546  ;;  %v316_v30 = vmul.f32 %v545_v28, %v313_v26 }
 0x13a   : > { %v328_v31 = vmul.f32 %v547_v29, %v314_v27 }
 0x13b   : > { %v317_v32 = vmul.f32 %v545_v28, %v316_v30 }
 0x13c   : > { %v329_v33 = vmul.f32 %v547_v29, %v328_v31 }
 0x13d   : > { %v318_v34 = vmul.f32 0.5, %v317_v32 }
 0x13e   : > { %v330_v35 = vmul.f32 0.5, %v329_v33 }
 0x13f   : > { %v319_v36 = vsub.f32 1.5, %v318_v34 }
 0x140   : > { %v331_v37 = vsub.f32 1.5, %v330_v35 }
 0x141   : > { %v320_v38 = vmul.f32 %v545_v28, %v319_v36 }
 0x142   : > { %v332_v39 = vmul.f32 %v547_v29, %v331_v37 }
 0x143   : > { %v321_v40 = vmul.f32 %v320_v38, %v313_v26 }
 0x144   : > { %v333_v42 = vmul.f32 %v332_v39, %v314_v27 }
 0x145   : > { %v323_v43 = vsel %vm322_vm1, %v313_v26, %v321_v40 }
 0x146   : > { %v326_v45 = vsel %vm324_vm3, %v325_v41, %v323_v43  ;;  %v335_v46 = vsel %vm334_vm4, %v314_v27, %v333_v42 }
 0x147   : > { %v338_v47 = vsel %vm336_vm5, %v337_v44, %v335_v46  ;;  %340 = vst.msk [vmem:[%s196_s15] sm:$0xff] %vm339_vm2, %v326_v45 }
 0x148   : > { %341 = vst.msk [vmem:[%s196_s15 + $0x8] sm:$0xff] %vm339_vm2, %v338_v47 }
 0x149   : > { %575 = shalt.err (!%p572_p5)
}
 0x14a   : > { %s628_s29 = smov 128   ;;  %s629_s30 = smov 8  }
 0x14b   : > { %486 = dma.vmem_to_hbm [thread:$0]  (%p685_p4), %s359_s16, 256, %s361_s18, %s343_s12, %s628_s29, %s628_s29, %s629_s30  }
 0x14c PF: > { %p492_p6 = scmp.ge.s32.totalorder %s626_s14, 2  ;;  %s375_s3 = sand.u32 1, %s606_s9  }
 0x14d   : > { %s376_s4 = scalar_lea.sflag [#allocation3], %s375_s3 }
 0x14e   : > { %p489_p7 = pnand %p492_p6, %p692_p8 }
 0x150   : > { %p490_p9 = pneg %p489_p7 }
 0x152   : > { %601 = dma.done.wait (%p490_p9), %s376_s4, 256  }
 0x153   : > { %603 = vsyncadd (%p490_p9), %s376_s4, 4294967040  ;;  %s15_s14 = sadd.s32 1, %s626_s14   ;;  %s764_s9 = smov %s610_s10 }
 0x154   : > { %p12_p10 = scmp.ge.s32.totalorder %s15_s14, 4   ;;  %s765_s10 = smov %s614_s11 }
 0x155   : > { %s766_s11 = smov %s698_s22  ;;  %s767_s12 = smov %s622_s13 }
 0x156   : > { %s768_s13 = smov %s770_s17  ;;  %14 = sbr.rel (!%p12_p10) target bundleno = 4 (0x4), region = 66 }
 0x15b   :  { %382 = vsyncpa [#allocation3], 1 }
 0x15c   :  { %384 = vsyncpa [#allocation3 + $0x1], 1 }

</bundles_post_ra>
